<compile_context>
chip_gen: v7x
topology: tpu7x:2x2x1
jax: 0.10.0
libtpu: 0.0.40
codegen_flags: <defaults>
</compile_context>

<pallas_src>
import functools

import jax
import jax.numpy as jnp
from jax.experimental import pallas as pl
from jax.experimental.pallas import tpu as pltpu

LANE = 128     # final-layer output columns padded to this -> unmasked full-lane vst
SUBLANE = 8    # batch tiles kept a multiple of this


def _round_up(x, m):
    return ((x + m - 1) // m) * m


def qnetwork_kernel(x_ref, w1_ref, b1_ref, w2_ref, b2_ref, w3_ref, b3_ref, o_ref):
    """One batch tile of the MLP forward.  Weights/biases are VMEM-resident."""
    # Layer 1: Linear(obs_dim, 256) + ReLU.  MXU matmul in the weight dtype
    # (bf16 by default), f32 accumulate, f32 bias-add / ReLU.
    x = x_ref[...].astype(w1_ref.dtype)
    h1 = jnp.dot(x, w1_ref[...], preferred_element_type=jnp.float32) + b1_ref[...]
    h1 = jnp.maximum(h1, 0.0)

    # Layer 2: Linear(256, 128) + ReLU.
    h2 = (jnp.dot(h1.astype(w2_ref.dtype), w2_ref[...],
                  preferred_element_type=jnp.float32) + b2_ref[...])
    h2 = jnp.maximum(h2, 0.0)

    # Layer 3: Linear(128, n_actions) lane-padded to 128 columns (no activation).
    o_ref[...] = (jnp.dot(h2.astype(w3_ref.dtype), w3_ref[...],
                          preferred_element_type=jnp.float32)
                  + b3_ref[...]).astype(o_ref.dtype)


def prepare_params(params, compute_dtype=jnp.bfloat16):
    """One-time prep: cast weights to the MXU operand dtype, lane-pad layer 3.

    Call once at init (NOT per forward) -- these are separate XLA ops and would
    otherwise be re-executed on every call.
    """
    w1, b1 = params["w1"], params["b1"]
    w2, b2 = params["w2"], params["b2"]
    w3, b3 = params["w3"], params["b3"]
    h2_dim, n_actions = w3.shape

    n_out_pad = _round_up(max(n_actions, 1), LANE)
    w3p = jnp.zeros((h2_dim, n_out_pad), compute_dtype).at[:, :n_actions].set(
        w3.astype(compute_dtype))
    b3p = jnp.zeros((1, n_out_pad), jnp.float32).at[:, :n_actions].set(
        b3.astype(jnp.float32))

    return {
        "w1": w1.astype(compute_dtype), "b1": b1.astype(jnp.float32),
        "w2": w2.astype(compute_dtype), "b2": b2.astype(jnp.float32),
        "w3p": w3p, "b3p": b3p,
    }


@functools.partial(
    jax.jit,
    static_argnames=("n_actions", "block_b", "slice_output", "out_dtype",
                     "vmem_limit_bytes"))
def qnetwork_forward(x, prepared, *, n_actions, block_b=2048, slice_output=True,
                     out_dtype=jnp.float32, vmem_limit_bytes=None):
    """x: (B, obs_dim) float32.  prepared: output of prepare_params()."""
    w1, b1 = prepared["w1"], prepared["b1"]
    w2, b2 = prepared["w2"], prepared["b2"]
    w3p, b3p = prepared["w3p"], prepared["b3p"]

    B, obs_dim = x.shape
    h1_dim = w1.shape[1]
    h2_dim = w2.shape[1]
    n_out_pad = w3p.shape[1]

    # Batch tile: multiple of 8 sublanes, capped so the grid has >= 2 steps whenever
    # B allows it (lets "parallel" shard batch tiles across both TCs on v7x).
    tb = min(block_b, max(SUBLANE, _round_up(pl.cdiv(B, 2), SUBLANE)))
    grid = (pl.cdiv(B, tb),)   # no jnp.pad: Pallas masks the partial edge block

    resident = lambda i: (0, 0)   # weights/biases: same block every grid step
    batched = lambda i: (i, 0)    # x / out: one batch tile per grid step
    # NOTE: resident operands would ideally be single-buffered (pipeline_mode); the
    # weight footprint here is ~0.1 MiB so the double-buffer cost is negligible.

    out = pl.pallas_call(
        qnetwork_kernel,
        out_shape=jax.ShapeDtypeStruct((B, n_out_pad), out_dtype),
        grid_spec=pltpu.PrefetchScalarGridSpec(
            num_scalar_prefetch=0,
            grid=grid,
            in_specs=[
                pl.BlockSpec((tb, obs_dim), batched),         # x tile (streamed)
                pl.BlockSpec((obs_dim, h1_dim), resident),    # w1
                pl.BlockSpec((1, h1_dim), resident),          # b1
                pl.BlockSpec((h1_dim, h2_dim), resident),     # w2
                pl.BlockSpec((1, h2_dim), resident),          # b2
                pl.BlockSpec((h2_dim, n_out_pad), resident),  # w3 (lane-padded)
                pl.BlockSpec((1, n_out_pad), resident),       # b3 (lane-padded)
            ],
            out_specs=pl.BlockSpec((tb, n_out_pad), batched),
        ),
        compiler_params=pltpu.CompilerParams(
            dimension_semantics=("parallel",),   # megacore sharding on v7x
            vmem_limit_bytes=vmem_limit_bytes,
        ),
    )(x, w1, b1, w2, b2, w3p, b3p)

    if slice_output:
        # Extra (B, n_out_pad)-sized HBM pass; pass slice_output=False and slice
        # lazily at the consumer (argmax/gather) when chasing the memory roofline.
        return out[:, :n_actions]
    return out


def init_params(key, obs_dim, n_actions):
    """Deterministic synthetic init (uniform, like torch's default Linear init).
    Weights stored (in_features, out_features): y = x @ W + b == torch's x @ W.T + b."""
    keys = jax.random.split(key, 6)

    def linear(kw, kb, fan_in, fan_out):
        bound = 1.0 / jnp.sqrt(jnp.float32(fan_in))
        w = jax.random.uniform(kw, (fan_in, fan_out), jnp.float32, -bound, bound)
        b = jax.random.uniform(kb, (1, fan_out), jnp.float32, -bound, bound)
        return w, b

    w1, b1 = linear(keys[0], keys[1], obs_dim, 256)
    w2, b2 = linear(keys[2], keys[3], 256, 128)
    w3, b3 = linear(keys[4], keys[5], 128, n_actions)
    return {"w1": w1, "b1": b1, "w2": w2, "b2": b2, "w3": w3, "b3": b3}


def _reference(x, p):
    h1 = jnp.maximum(x @ p["w1"] + p["b1"], 0.0)
    h2 = jnp.maximum(h1 @ p["w2"] + p["b2"], 0.0)
    return h2 @ p["w3"] + p["b3"]


if __name__ == "__main__":
    key = jax.random.PRNGKey(0)
    B, obs_dim, n_actions = 8, 16, 4  # small env: 16-dim observation, 4 actions

    k_x, k_p, k_x2 = jax.random.split(key, 3)
    x = jax.random.normal(k_x, (B, obs_dim), dtype=jnp.float32)
    params = init_params(k_p, obs_dim, n_actions)

    ref = _reference(x, params)

    # f32 MXU-operand path: tight tolerance, verifies kernel structure exactly.
    prep_f32 = prepare_params(params, compute_dtype=jnp.float32)
    out_f32 = jax.block_until_ready(qnetwork_forward(x, prep_f32, n_actions=n_actions))
    assert out_f32.shape == (B, n_actions)
    assert jnp.allclose(out_f32, ref, atol=1e-4, rtol=1e-4), "f32 path mismatch"

    # Default bf16 MXU-operand path (f32 accumulate): looser tolerance, fine for DQN.
    prep = prepare_params(params)   # compute_dtype=bfloat16 default
    out_bf = jax.block_until_ready(qnetwork_forward(x, prep, n_actions=n_actions))
    assert out_bf.shape == (B, n_actions)
    assert jnp.allclose(out_bf, ref, atol=2e-2, rtol=2e-2), "bf16 path mismatch (B=8)"

    # Multi-tile grid with a partial edge block (no wrapper-side padding).
    B2 = 200
    x2 = jax.random.normal(k_x2, (B2, obs_dim), dtype=jnp.float32)
    ref2 = _reference(x2, params)
    out2 = jax.block_until_ready(
        qnetwork_forward(x2, prep, n_actions=n_actions, block_b=64))
    assert out2.shape == (B2, n_actions)
    assert jnp.allclose(out2, ref2, atol=2e-2, rtol=2e-2), "bf16 path mismatch (B=200)"

    # Un-sliced lane-padded output path (skips the extra output HBM pass).
    out2_pad = jax.block_until_ready(
        qnetwork_forward(x2, prep, n_actions=n_actions, block_b=64,
                         slice_output=False))
    assert out2_pad.shape == (B2, LANE)
    assert jnp.allclose(out2_pad[:, :n_actions], ref2, atol=2e-2, rtol=2e-2), \
        "padded-output path mismatch"

    print("KERNEL_OK")
</pallas_src>

<mosaic_0001>
module attributes {stable_mosaic.version = 11 : i64} {
  func.func @qnetwork_kernel(%arg0: i32, %arg1: memref<8x16xf32, #tpu.memory_space<vmem>>, %arg2: memref<16x256xf32, #tpu.memory_space<vmem>>, %arg3: memref<1x256xf32, #tpu.memory_space<vmem>>, %arg4: memref<256x128xf32, #tpu.memory_space<vmem>>, %arg5: memref<1x128xf32, #tpu.memory_space<vmem>>, %arg6: memref<128x128xf32, #tpu.memory_space<vmem>>, %arg7: memref<1x128xf32, #tpu.memory_space<vmem>>, %arg8: memref<8x128xf32, #tpu.memory_space<vmem>>) attributes {dimension_semantics = [#tpu.dimension_semantics<parallel>], iteration_bounds = array<i64: 1>, scalar_prefetch = 0 : i64, scratch_operands = 0 : i64, tpu.core_type = #tpu.core_type<tc>, window_params = [{transform_indices = @transform_0, window_bounds = array<i64: 8, 16>}, {pipeline_mode = #tpu.pipeline_mode<synchronous>, transform_indices = @transform_1, window_bounds = array<i64: 16, 256>}, {pipeline_mode = #tpu.pipeline_mode<synchronous>, transform_indices = @transform_2, window_bounds = array<i64: 1, 256>}, {pipeline_mode = #tpu.pipeline_mode<synchronous>, transform_indices = @transform_3, window_bounds = array<i64: 256, 128>}, {pipeline_mode = #tpu.pipeline_mode<synchronous>, transform_indices = @transform_4, window_bounds = array<i64: 1, 128>}, {pipeline_mode = #tpu.pipeline_mode<synchronous>, transform_indices = @transform_5, window_bounds = array<i64: 128, 128>}, {pipeline_mode = #tpu.pipeline_mode<synchronous>, transform_indices = @transform_6, window_bounds = array<i64: 1, 128>}, {transform_indices = @transform_7, window_bounds = array<i64: 8, 128>}]} {
    %c0 = arith.constant 0 : index
    %c0_0 = arith.constant 0 : index
    %0 = vector.load %arg1[%c0, %c0_0] : memref<8x16xf32, #tpu.memory_space<vmem>>, vector<8x16xf32>
    %c0_1 = arith.constant 0 : index
    %c0_2 = arith.constant 0 : index
    %1 = vector.load %arg2[%c0_1, %c0_2] : memref<16x256xf32, #tpu.memory_space<vmem>>, vector<16x256xf32>
    %cst = arith.constant dense<0.000000e+00> : vector<8x256xf32>
    %2 = tpu.matmul %0, %1, %cst {dimension_numbers = #tpu.dot_dimension_numbers<[1], [0], [0], [1], [0, 0, 1, 1], [], []>} : vector<8x16xf32>, vector<16x256xf32>, vector<8x256xf32> -> vector<8x256xf32>
    %c0_3 = arith.constant 0 : index
    %c0_4 = arith.constant 0 : index
    %3 = vector.load %arg3[%c0_3, %c0_4] : memref<1x256xf32, #tpu.memory_space<vmem>>, vector<1x256xf32>
    %4 = vector.broadcast %3 : vector<1x256xf32> to vector<8x256xf32>
    %5 = arith.addf %2, %4 : vector<8x256xf32>
    %cst_5 = arith.constant 0.000000e+00 : f32
    %6 = vector.broadcast %cst_5 : f32 to vector<8x256xf32>
    %7 = arith.maximumf %5, %6 : vector<8x256xf32>
    %c0_6 = arith.constant 0 : index
    %c0_7 = arith.constant 0 : index
    %8 = vector.load %arg4[%c0_6, %c0_7] : memref<256x128xf32, #tpu.memory_space<vmem>>, vector<256x128xf32>
    %cst_8 = arith.constant dense<0.000000e+00> : vector<8x128xf32>
    %9 = tpu.matmul %7, %8, %cst_8 {dimension_numbers = #tpu.dot_dimension_numbers<[1], [0], [0], [1], [0, 0, 1, 1], [], []>} : vector<8x256xf32>, vector<256x128xf32>, vector<8x128xf32> -> vector<8x128xf32>
    %c0_9 = arith.constant 0 : index
    %c0_10 = arith.constant 0 : index
    %10 = vector.load %arg5[%c0_9, %c0_10] : memref<1x128xf32, #tpu.memory_space<vmem>>, vector<1x128xf32>
    %11 = vector.broadcast %10 : vector<1x128xf32> to vector<8x128xf32>
    %12 = arith.addf %9, %11 : vector<8x128xf32>
    %cst_11 = arith.constant 0.000000e+00 : f32
    %13 = vector.broadcast %cst_11 : f32 to vector<8x128xf32>
    %14 = arith.maximumf %12, %13 : vector<8x128xf32>
    %c0_12 = arith.constant 0 : index
    %c0_13 = arith.constant 0 : index
    %15 = vector.load %arg6[%c0_12, %c0_13] : memref<128x128xf32, #tpu.memory_space<vmem>>, vector<128x128xf32>
    %cst_14 = arith.constant dense<0.000000e+00> : vector<8x128xf32>
    %16 = tpu.matmul %14, %15, %cst_14 {dimension_numbers = #tpu.dot_dimension_numbers<[1], [0], [0], [1], [0, 0, 1, 1], [], []>} : vector<8x128xf32>, vector<128x128xf32>, vector<8x128xf32> -> vector<8x128xf32>
    %c0_15 = arith.constant 0 : index
    %c0_16 = arith.constant 0 : index
    %17 = vector.load %arg7[%c0_15, %c0_16] : memref<1x128xf32, #tpu.memory_space<vmem>>, vector<1x128xf32>
    %18 = vector.broadcast %17 : vector<1x128xf32> to vector<8x128xf32>
    %19 = arith.addf %16, %18 : vector<8x128xf32>
    %c0_17 = arith.constant 0 : index
    %c0_18 = arith.constant 0 : index
    %20 = vector.load %arg8[%c0_17, %c0_18] : memref<8x128xf32, #tpu.memory_space<vmem>>, vector<8x128xf32>
    tpu.vector_store %arg8[%c0_17, %c0_18], %19 {strides = array<i32>} : memref<8x128xf32, #tpu.memory_space<vmem>>, vector<8x128xf32>,
    return
  }
  func.func @transform_0(%arg0: i32) -> (i32, i32) {
    %c0_i32 = arith.constant 0 : i32
    %c0_i32_0 = arith.constant 0 : i32
    return %arg0, %c0_i32 : i32, i32
  }
  func.func @transform_1(%arg0: i32) -> (i32, i32) {
    %c0_i32 = arith.constant 0 : i32
    %c0_i32_0 = arith.constant 0 : i32
    %c0_i32_1 = arith.constant 0 : i32
    return %c0_i32, %c0_i32_0 : i32, i32
  }
  func.func @transform_2(%arg0: i32) -> (i32, i32) {
    %c0_i32 = arith.constant 0 : i32
    %c0_i32_0 = arith.constant 0 : i32
    %c0_i32_1 = arith.constant 0 : i32
    return %c0_i32, %c0_i32_0 : i32, i32
  }
  func.func @transform_3(%arg0: i32) -> (i32, i32) {
    %c0_i32 = arith.constant 0 : i32
    %c0_i32_0 = arith.constant 0 : i32
    %c0_i32_1 = arith.constant 0 : i32
    return %c0_i32, %c0_i32_0 : i32, i32
  }
  func.func @transform_4(%arg0: i32) -> (i32, i32) {
    %c0_i32 = arith.constant 0 : i32
    %c0_i32_0 = arith.constant 0 : i32
    %c0_i32_1 = arith.constant 0 : i32
    return %c0_i32, %c0_i32_0 : i32, i32
  }
  func.func @transform_5(%arg0: i32) -> (i32, i32) {
    %c0_i32 = arith.constant 0 : i32
    %c0_i32_0 = arith.constant 0 : i32
    %c0_i32_1 = arith.constant 0 : i32
    return %c0_i32, %c0_i32_0 : i32, i32
  }
  func.func @transform_6(%arg0: i32) -> (i32, i32) {
    %c0_i32 = arith.constant 0 : i32
    %c0_i32_0 = arith.constant 0 : i32
    %c0_i32_1 = arith.constant 0 : i32
    return %c0_i32, %c0_i32_0 : i32, i32
  }
  func.func @transform_7(%arg0: i32) -> (i32, i32) {
    %c0_i32 = arith.constant 0 : i32
    %c0_i32_0 = arith.constant 0 : i32
    return %arg0, %c0_i32 : i32, i32
  }
}

</mosaic_0001>

<bundles_post_ra>
// kernel: qnetwork_forward.1
= control target key start
LH: loop header
LB: loop body
LE: loop exit
PB: predicated region body
PF: predicated region fallthrough
CT: control target
= control target key end

     0   :  { %12 = vsyncpa [#allocation3], 0  ;;  %s752_s0 = inlined_call_operand.hbm [shape: f32[8,16], index: 0, kind: input, shape index: {}]   ;;  %s753_s1 = inlined_call_operand.hbm [shape: f32[16,256], index: 1, kind: input, shape index: {}]   ;;  %s754_s2 = inlined_call_operand.vmem [shape: f32[1,256], index: 2, kind: input, shape index: {}]   ;;  %s755_s3 = inlined_call_operand.hbm [shape: f32[256,128], index: 3, kind: input, shape index: {}]   ;;  %s756_s4 = inlined_call_operand.vmem [shape: f32[1,128], index: 4, kind: input, shape index: {}]   ;;  %s757_s5 = inlined_call_operand.hbm [shape: f32[128,128], index: 5, kind: input, shape index: {}]   ;;  %s758_s6 = inlined_call_operand.vmem [shape: f32[1,128], index: 6, kind: input, shape index: {}]   ;;  %s759_s7 = inlined_call_operand.vmem [shape: f32[8,128], index: 7, kind: output, shape index: {}]  }
   0x1   :  { %13 = vsyncpa [#allocation5], 0 }
   0x2   :  { %14 = vsyncpa [#allocation8], 0  ;;  %s639_s24 = smov [#allocation4]   ;;  %s545_s28 = scalar_lea.hbm %s753_s1, 512 }
   0x3   :  { %s30_s25 = sshll.u32 %s639_s24, 4  ;;  %p546_p0 = scmp.ne.s32.totalorder %s753_s1, %s545_s28  ;;  %s31_s25 = int_to_ptr.vmem [resolvable:$true] %s30_s25 }
   0x4   :  { %p549_p1 = scmp.lt.u32.totalorder %s545_s28, %s753_s1 }
   0x6   :  { %p551_p2 = pnand %p549_p1, %p546_p0 }
   0x8   :  { %554 = shalt.err (!%p551_p2)
}
   0x9   :  { %s555_s10 = scalar_lea.vmem %s31_s25, 512  ;;  %p560_p4 = scmp.lt.s32.totalorder %s31_s25, %s31_s25 }
   0xa   :  { %p556_p3 = scmp.ne.s32.totalorder %s31_s25, %s555_s10  ;;  %p561_p5 = scmp.lt.s32.totalorder %s555_s10, %s555_s10 }
   0xc   :  { %p562_p6 = por %p561_p5, %p560_p4 }
   0xe   :  { %p563_p7 = pnand %p562_p6, %p556_p3 }
  0x10   :  { %566 = shalt.err (!%p563_p7)
}
  0x11   :  { %s640_s11 = smov 256   ;;  %s641_s12 = smov 16  }
  0x12   :  { %36 = dma.hbm_to_vmem [thread:$0]  %s753_s1, 512, %s31_s25, [#allocation5], %s640_s11, %s640_s11, %s641_s12  }
  0x13   :  { %s642_s15 = smov [#allocation2]   ;;  %s643_s17 = smov [#allocation6]  }
  0x14   :  { %s21_s16 = sshll.u32 %s642_s15, 4  ;;  %s44_s18 = sshll.u32 %s643_s17, 4  ;;  %s22_s16 = int_to_ptr.vmem [resolvable:$true] %s21_s16  ;;  %s45_s18 = int_to_ptr.vmem [resolvable:$true] %s44_s18 }
  0x15   :  { %s567_s21 = scalar_lea.hbm %s752_s0, 128 }
  0x16   :  { %p568_p8 = scmp.ne.s32.totalorder %s752_s0, %s567_s21  ;;  %p571_p9 = scmp.lt.u32.totalorder %s567_s21, %s752_s0 }
  0x18   :  { %p573_p10 = pnand %p571_p9, %p568_p8 }
  0x1a   :  { %576 = shalt.err (!%p573_p10)
}
  0x1b   :  { %s577_s1 = scalar_lea.vmem %s22_s16, 128  ;;  %p582_p12 = scmp.lt.s32.totalorder %s22_s16, %s22_s16 }
  0x1c   :  { %p578_p11 = scmp.ne.s32.totalorder %s22_s16, %s577_s1  ;;  %p583_p13 = scmp.lt.s32.totalorder %s577_s1, %s577_s1 }
  0x1e   :  { %p584_p0 = por %p583_p13, %p582_p12 }
  0x20   :  { %p585_p1 = pnand %p584_p0, %p578_p11 }
  0x22   :  { %588 = shalt.err (!%p585_p1)
}
  0x23   :  { %24 = dma.hbm_to_vmem [thread:$0]  %s752_s0, 128, %s22_s16, [#allocation3]  }
  0x24   :  { %s589_s30 = scalar_lea.hbm %s755_s3, 4096 }
  0x25   :  { %p590_p2 = scmp.ne.s32.totalorder %s755_s3, %s589_s30  ;;  %p593_p3 = scmp.lt.u32.totalorder %s589_s30, %s755_s3 }
  0x27   :  { %p595_p4 = pnand %p593_p3, %p590_p2 }
  0x29   :  { %598 = shalt.err (!%p595_p4)
}
  0x2a   :  { %s599_s12 = scalar_lea.vmem %s45_s18, 4096  ;;  %p604_p6 = scmp.lt.s32.totalorder %s45_s18, %s45_s18 }
  0x2b   :  { %p600_p5 = scmp.ne.s32.totalorder %s45_s18, %s599_s12  ;;  %p605_p7 = scmp.lt.s32.totalorder %s599_s12, %s599_s12 }
  0x2d   :  { %p606_p8 = por %p605_p7, %p604_p6 }
  0x2f   :  { %p607_p9 = pnand %p606_p8, %p600_p5 }
  0x31   :  { %610 = shalt.err (!%p607_p9)
}
  0x32   :  { %s644_s0 = smov 128   ;;  %s645_s13 = smov 8  }
  0x33   :  { %50 = dma.hbm_to_vmem [thread:$0]  %s755_s3, 4096, %s45_s18, [#allocation5], %s644_s0, %s644_s0, %s645_s13  }
  0x34   :  { %s646_s16 = smov [#allocation7]   ;;  %s611_s21 = scalar_lea.hbm %s757_s5, 2048 }
  0x35   :  { %s58_s17 = sshll.u32 %s646_s16, 4  ;;  %p612_p10 = scmp.ne.s32.totalorder %s757_s5, %s611_s21  ;;  %s59_s17 = int_to_ptr.vmem [resolvable:$true] %s58_s17 }
  0x36   :  { %p615_p11 = scmp.lt.u32.totalorder %s611_s21, %s757_s5 }
  0x38   :  { %p617_p12 = pnand %p615_p11, %p612_p10 }
  0x3a   :  { %620 = shalt.err (!%p617_p12)
}
  0x3b   :  { %s621_s1 = scalar_lea.vmem %s59_s17, 2048  ;;  %p626_p0 = scmp.lt.s32.totalorder %s59_s17, %s59_s17 }
  0x3c   :  { %p622_p13 = scmp.ne.s32.totalorder %s59_s17, %s621_s1  ;;  %p627_p1 = scmp.lt.s32.totalorder %s621_s1, %s621_s1 }
  0x3e   :  { %p628_p2 = por %p627_p1, %p626_p0 }
  0x40   :  { %p629_p3 = pnand %p628_p2, %p622_p13 }
  0x42   :  { %632 = shalt.err (!%p629_p3)
}
  0x43   :  { %64 = dma.hbm_to_vmem [thread:$0]  %s757_s5, 2048, %s59_s17, [#allocation8], %s644_s0, %s644_s0, %s645_s13  }
  0x44   :  { %633 = dma.done.wait [#allocation3], 128  }
  0x45   :  { %634 = vsyncadd [#allocation3], 4294967168 }
  0x46   :  { %635 = dma.done.wait [#allocation5], 4608  }
  0x47   :  { %636 = vsyncadd [#allocation5], 4294962688 }
  0x48   :  { %637 = dma.done.wait [#allocation8], 2048  }
  0x49   :  { %638 = vsyncadd [#allocation8], 4294965248  ;;  %v647_v0 = vmov 0.0   ;;  %v81_v1 = vld [vmem:[#allocation4 + $0x8] sm:$0xff]  ;;  %v83_v2 = vld [vmem:[#allocation4 + $0x18] sm:$0xff]  ;;  %vm96_vm0 = vcmask 130048  }
  0x4a   :  { %164 = vmatprep.mubr.f32.mxu0 %v647_v0  ;;  %v80_v3 = vld [vmem:[#allocation4] sm:$0xff]  ;;  %v474_v4 = vpack.c.bf16 %v83_v2, %v81_v1  ;;  %v82_v5 = vld [vmem:[#allocation4 + $0x10] sm:$0xff]  ;;  %v79_v8 = vld [vmem:[#allocation2] sm:$0xff]  ;;  %v648_v59 = vmov 0.0|0.0   ;;  %vm649_vm1 = vmmov 0  }
  0x4b   :  { %v189_v6 = vld [vmem:[#allocation6 + $0x80] sm:$0xff]  ;;  %v476_v7 = vpack.c.bf16 %v82_v5, %v80_v3  ;;  %v190_v9 = vld [vmem:[#allocation6 + $0x88] sm:$0xff]  ;;  %v191_v14 = vld [vmem:[#allocation6 + $0x90] sm:$0xff] }
  0x4c   :  { %v173_v10 = vld [vmem:[#allocation6] sm:$0xff]  ;;  %v174_v11 = vld [vmem:[#allocation6 + $0x8] sm:$0xff]  ;;  %475 = vmatprep.subr.bf16.mxu0 %v474_v4  ;;  %v478_v12 = vpack.c.bf16 %v190_v9, %v189_v6  ;;  %v192_v15 = vld [vmem:[#allocation6 + $0x98] sm:$0xff] }
  0x4d   :  { %v480_v13 = vpack.c.bf16 %v174_v11, %v173_v10  ;;  %v175_v16 = vld [vmem:[#allocation6 + $0x10] sm:$0xff]  ;;  %477 = vmatpush1.bf16.msra.mxu0 %v476_v7  ;;  %v482_v17 = vpack.c.bf16 %v192_v15, %v191_v14  ;;  %v176_v18 = vld [vmem:[#allocation6 + $0x18] sm:$0xff]  ;;  %v193_v19 = vld [vmem:[#allocation6 + $0xa0] sm:$0xff] }
  0x4e   :  { %v194_v20 = vld [vmem:[#allocation6 + $0xa8] sm:$0xff]  ;;  %479 = vmatprep.subr.bf16.mxu1 %v478_v12  ;;  %v484_v21 = vpack.c.bf16 %v176_v18, %v175_v16  ;;  %v177_v23 = vld [vmem:[#allocation6 + $0x20] sm:$0xff]  ;;  %v195_v25 = vld [vmem:[#allocation6 + $0xb0] sm:$0xff]  ;;  %510 = vmatprep.subr.bf16.mxu0 %v648_v59  ;;  %v86_v12 = vlaneseq }
  0x4f   :  { %481 = vmatpush3.bf16.msra.mxu1 %v480_v13  ;;  %v486_v22 = vpack.c.bf16 %v194_v20, %v193_v19  ;;  %v178_v24 = vld [vmem:[#allocation6 + $0x28] sm:$0xff]  ;;  %v196_v26 = vld [vmem:[#allocation6 + $0xb8] sm:$0xff]  ;;  %v179_v29 = vld [vmem:[#allocation6 + $0x30] sm:$0xff] }
  0x50   :  { %384 = vmatmul.mubr.msk.f32.vlgmr.msra.gmra.mrb[0].mxu0 %vm96_vm0, %v79_v8  ;;  %483 = vmatprep.subr.bf16.mxu1 %v482_v17  ;;  %v488_v27 = vpack.c.bf16 %v178_v24, %v177_v23  ;;  %v490_v28 = vpack.c.bf16 %v196_v26, %v195_v25  ;;  %v180_v30 = vld [vmem:[#allocation6 + $0x38] sm:$0xff]  ;;  %v197_v31 = vld [vmem:[#allocation6 + $0xc0] sm:$0xff]  ;;  %v198_v32 = vld [vmem:[#allocation6 + $0xc8] sm:$0xff]  ;;  %v87_v13 = vshrl.u32 %v86_v12, 7 }
  0x51   :  { %v492_v33 = vpack.c.bf16 %v180_v30, %v179_v29  ;;  %v494_v34 = vpack.c.bf16 %v198_v32, %v197_v31  ;;  %v181_v35 = vld [vmem:[#allocation6 + $0x40] sm:$0xff]  ;;  %v182_v36 = vld [vmem:[#allocation6 + $0x48] sm:$0xff]  ;;  %v199_v37 = vld [vmem:[#allocation6 + $0xd0] sm:$0xff]  ;;  %471 = vmatprep.mubr.msk.f32.mxu0 %vm649_vm1, %v647_v0 }
  0x52   :  { %v200_v38 = vld [vmem:[#allocation6 + $0xd8] sm:$0xff]  ;;  %v496_v39 = vpack.c.bf16 %v182_v36, %v181_v35  ;;  %v183_v41 = vld [vmem:[#allocation6 + $0x50] sm:$0xff]  ;;  %v201_v43 = vld [vmem:[#allocation6 + $0xe0] sm:$0xff]  ;;  %v88_v14 = vsub.s32 0, %v87_v13  ;;  %v92_v16 = vsub.s32 1, %v87_v13 }
  0x53   :  { %485 = vmatpush3.bf16.msra.mxu1 %v484_v21  ;;  %v498_v40 = vpack.c.bf16 %v200_v38, %v199_v37  ;;  %v184_v42 = vld [vmem:[#allocation6 + $0x58] sm:$0xff]  ;;  %v202_v44 = vld [vmem:[#allocation6 + $0xe8] sm:$0xff]  ;;  %v185_v47 = vld [vmem:[#allocation6 + $0x60] sm:$0xff] }
  0x54   :  { %487 = vmatprep.subr.bf16.mxu1 %v486_v22  ;;  %v500_v45 = vpack.c.bf16 %v184_v42, %v183_v41  ;;  %v502_v46 = vpack.c.bf16 %v202_v44, %v201_v43  ;;  %v186_v48 = vld [vmem:[#allocation6 + $0x68] sm:$0xff]  ;;  %v203_v50 = vld [vmem:[#allocation6 + $0xf0] sm:$0xff]  ;;  %v204_v51 = vld [vmem:[#allocation6 + $0xf8] sm:$0xff] }
  0x55   :  { %v504_v49 = vpack.c.bf16 %v186_v48, %v185_v47  ;;  %v506_v52 = vpack.c.bf16 %v204_v51, %v203_v50  ;;  %v187_v53 = vld [vmem:[#allocation6 + $0x70] sm:$0xff]  ;;  %v188_v54 = vld [vmem:[#allocation6 + $0x78] sm:$0xff]  ;;  %v283_v56 = vld [vmem:[#allocation7] sm:$0xff] }
  0x56   :  { %v508_v55 = vpack.c.bf16 %v188_v54, %v187_v53  ;;  %v284_v57 = vld [vmem:[#allocation7 + $0x8] sm:$0xff]  ;;  %v285_v58 = vld [vmem:[#allocation7 + $0x10] sm:$0xff]  ;;  %v286_v61 = vld [vmem:[#allocation7 + $0x18] sm:$0xff] }
  0x57   :  { %489 = vmatpush3.bf16.msra.mxu1 %v488_v27  ;;  %v511_v60 = vpack.c.bf16 %v284_v57, %v283_v56  ;;  %v514_v62 = vpack.c.bf16 %v286_v61, %v285_v58  ;;  %v287_v63 = vld [vmem:[#allocation7 + $0x20] sm:$0xff]  ;;  %v288_v1 = vld [vmem:[#allocation7 + $0x28] sm:$0xff]  ;;  %v289_v3 = vld [vmem:[#allocation7 + $0x30] sm:$0xff] }
  0x58   :  { %491 = vmatprep.subr.bf16.mxu1 %v490_v28  ;;  %v517_v2 = vpack.c.bf16 %v288_v1, %v287_v63  ;;  %v290_v4 = vld [vmem:[#allocation7 + $0x38] sm:$0xff]  ;;  %v291_v6 = vld [vmem:[#allocation7 + $0x40] sm:$0xff]  ;;  %v292_v7 = vld [vmem:[#allocation7 + $0x48] sm:$0xff] }
  0x59   :  { %512 = vmatpush3.bf16.msra.mxu0 %v511_v60  ;;  %v520_v5 = vpack.c.bf16 %v290_v4, %v289_v3  ;;  %v523_v8 = vpack.c.bf16 %v292_v7, %v291_v6  ;;  %v293_v9 = vld [vmem:[#allocation7 + $0x50] sm:$0xff]  ;;  %v294_v10 = vld [vmem:[#allocation7 + $0x58] sm:$0xff]  ;;  %v295_v25 = vld [vmem:[#allocation7 + $0x60] sm:$0xff] }
  0x5a   :  { %513 = vmatprep.subr.bf16.mxu0 %v648_v59  ;;  %v526_v11 = vpack.c.bf16 %v294_v10, %v293_v9  ;;  %v84_v15 = vld [vmem:[%s754_s2] sm:$0x3]  ;;  %v296_v26 = vld [vmem:[#allocation7 + $0x68] sm:$0xff]  ;;  %v297_v28 = vld [vmem:[#allocation7 + $0x70] sm:$0xff] }
  0x5b   :  { %493 = vmatpush3.bf16.msra.mxu1 %v492_v33  ;;  %v89_v17 = vrot.slane %v84_v15, %v88_v14  ;;  %v93_v18 = vrot.slane %v84_v15, %v92_v16  ;;  %v529_v27 = vpack.c.bf16 %v296_v26, %v295_v25  ;;  %v298_v29 = vld [vmem:[#allocation7 + $0x78] sm:$0xff] }
  0x5c   :  { %495 = vmatprep.subr.bf16.mxu1 %v494_v34  ;;  %v532_v30 = vpack.c.bf16 %v298_v29, %v297_v28  ;;  %v385_v32 = vld [vmem:[%s756_s4] ss:$0 sm:$0xff] }
  0x5d   :  { %515 = vmatpush3.bf16.msra.mxu0 %v514_v62  ;;  %v386_v37 = vld [vmem:[%s758_s6] ss:$0 sm:$0xff] }
  0x5e   :  { %516 = vmatprep.subr.bf16.mxu0 %v648_v59 }
  0x5f   :  { %497 = vmatpush3.bf16.msra.mxu1 %v496_v39 }
  0x60   :  { %499 = vmatprep.subr.bf16.mxu1 %v498_v40 }
  0x61   :  { %518 = vmatpush3.bf16.msra.mxu0 %v517_v2 }
  0x62   :  { %519 = vmatprep.subr.bf16.mxu0 %v648_v59 }
  0x63   :  { %501 = vmatpush3.bf16.msra.mxu1 %v500_v45 }
  0x64   :  { %503 = vmatprep.subr.bf16.mxu1 %v502_v46 }
  0x65   :  { %521 = vmatpush3.bf16.msra.mxu0 %v520_v5 }
  0x66   :  { %522 = vmatprep.subr.bf16.mxu0 %v648_v59 }
  0x67   :  { %505 = vmatpush3.bf16.msra.mxu1 %v504_v49 }
  0x68   :  { %507 = vmatprep.subr.bf16.mxu1 %v506_v52 }
  0x69   :  { %524 = vmatpush3.bf16.msra.mxu0 %v523_v8 }
  0x6a   :  { %525 = vmatprep.subr.bf16.mxu0 %v648_v59 }
  0x6b   :  { %509 = vmatpush3.bf16.msra.mxu1 %v508_v55 }
  0x6d   :  { %527 = vmatpush3.bf16.msra.mxu0 %v526_v11 }
  0x6e   :  { %528 = vmatprep.subr.bf16.mxu0 %v648_v59 }
  0x71   :  { %530 = vmatpush3.bf16.msra.mxu0 %v529_v27 }
  0x72   :  { %531 = vmatprep.subr.bf16.mxu0 %v648_v59 }
  0x75   :  { %533 = vmatpush3.bf16.msra.mxu0 %v532_v30 }
 0x123   :  { %v166_v19 = vpop.f32.mrb[0].mxu0 }
 0x124   :  { %v167_v20 = vadd.f32 %v166_v19, %v89_v17  ;;  %v168_v21 = vpop.f32.mrb[1].mxu0 }
 0x125   :  { %v169_v22 = vadd.f32 %v168_v21, %v93_v18 }
 0x126   :  { %v171_v24 = vmax.f32 %v167_v20, 0.0 }
 0x127   :  { %v172_v23 = vmax.f32 %v169_v22, 0.0 }
 0x129   :  { %276 = vmatprep.mubr.f32.mxu1 %v172_v23 }
 0x12a   :  { %277 = vmatmul.mubr.f32.vlgmr.msra.gmra.mrb[0].mxu1 %v171_v24 }
 0x1fd   :  { %v419_v31 = vpop.f32.mrb[0].mxu1 }
 0x1fe   :  { %v420_v33 = vpop.f32.mrb[1].mxu1 }
 0x1ff   :  { %v421_v34 = vadd.f32 %v420_v33, %v419_v31 }
 0x201   :  { %v279_v35 = vadd.f32 %v421_v34, %v385_v32 }
 0x203   :  { %v282_v36 = vmax.f32 %v279_v35, 0.0 }
 0x205   :  { %472 = vmatmul.mubr.f32.vlgmr.msra.gmra.mrb[2].mxu0 %v282_v36 }
 0x2d8   :  { %v372_v38 = vpop.f32.mrb[2].mxu0 }
 0x2d9   :  { %v373_v39 = vadd.f32 %v386_v37, %v372_v38  ;;  %v473_v40 = vpop.f32.mrb[3].mxu0 }
 0x2db   :  { %376 = vst [vmem:[%s759_s7] sm:$0xff] %v373_v39 }
 0x2dc   :  { %381 = vsyncpa [#allocation3], 1 }
 0x2dd   :  { %382 = vsyncpa [#allocation5], 1 }
 0x2de   :  { %383 = vsyncpa [#allocation8], 1 }

</bundles_post_ra>
